<compile_context>
chip_gen: v7x
topology: tpu7x:2x2x1
jax: 0.10.0
libtpu: 0.0.40
codegen_flags: <defaults>
</compile_context>

<pallas_src>
import jax
import jax.numpy as jnp
from jax.experimental import pallas as pl
from jax.experimental.pallas import tpu as pltpu

SUBLANE = 8


def classifier_kernel(emb_ref, w1_ref, b1_ref, w2_ref, b2_ref, out_ref):
    # emb_ref: (Bt, 256) native dtype   w1_ref: (256, 64) bf16   b1_ref: (1, 64) f32
    # w2_ref:  (64, C)   bf16           b2_ref: (1, C)    f32    out_ref: (Bt, C) f32
    x = emb_ref[...].astype(w1_ref.dtype)           # in-kernel cast: no extra HBM pass
    h = jnp.dot(x, w1_ref[...], preferred_element_type=jnp.float32)
    h = jax.nn.sigmoid(h + b1_ref[...])             # f32 epilogue (VPU + EUP)
    h = h.astype(w2_ref.dtype)                      # bf16 for the second MXU pass
    pred = jnp.dot(h, w2_ref[...], preferred_element_type=jnp.float32)
    out_ref[...] = (pred + b2_ref[...]).astype(out_ref.dtype)


def _round_up(x, m):
    return ((x + m - 1) // m) * m


def target_classifier_forward(emb, w1, b1, w2, b2, *, block_b=4096,
                              compute_dtype=jnp.bfloat16):
    """TFC target_classifier forward.

    emb: (B, 2, 128) or (B, 256); w1: (256, 64); b1: (64,) or (1, 64);
    w2: (64, C); b2: (C,) or (1, C).  Returns (B, C) float32.
    """
    B = emb.shape[0]
    emb_flat = emb.reshape(B, -1)                   # same as torch reshape (no copy)
    in_dim = emb_flat.shape[1]
    hid = w1.shape[1]
    num_classes = w2.shape[1]

    # ---- tiny host-side weight/bias prep (folds into jit; negligible traffic) ----
    w1_c = w1.astype(compute_dtype)
    w2_c = w2.astype(compute_dtype)
    b1_p = b1.reshape(1, hid).astype(jnp.float32)
    b2_p = b2.reshape(1, num_classes).astype(jnp.float32)

    # Batch tile: multiple of 8, capped at block_b and at ceil(B/2) (rounded up
    # to 8) so both v7x TensorCores get work whenever B is big enough for 2 tiles.
    half = _round_up(pl.cdiv(B, 2), SUBLANE)
    bt = max(SUBLANE, min(_round_up(block_b, SUBLANE), half))
    n_tiles = pl.cdiv(B, bt)                        # ragged last tile handled by Pallas

    # VMEM budget: double-buffered emb/out blocks + resident weights + headroom.
    emb_itemsize = jnp.dtype(emb_flat.dtype).itemsize
    weight_bytes = int(w1_c.size * jnp.dtype(w1_c.dtype).itemsize
                       + w2_c.size * jnp.dtype(w2_c.dtype).itemsize
                       + (b1_p.size + b2_p.size) * 4)
    block_bytes = int(bt * in_dim * emb_itemsize + bt * num_classes * 4)
    vmem_limit = int(min(max(2 * block_bytes + 2 * weight_bytes + (4 << 20),
                             16 << 20), 48 << 20))

    cost = pl.CostEstimate(
        flops=int(2 * B * (in_dim * hid + hid * num_classes)),
        transcendentals=int(B * hid),
        bytes_accessed=int(B * in_dim * emb_itemsize
                           + B * num_classes * 4 + weight_bytes),
    )

    out = pl.pallas_call(
        classifier_kernel,
        out_shape=jax.ShapeDtypeStruct((B, num_classes), jnp.float32),
        grid_spec=pltpu.PrefetchScalarGridSpec(
            num_scalar_prefetch=0,
            grid=(n_tiles,),
            in_specs=[
                pl.BlockSpec((bt, in_dim), lambda i: (i, 0)),          # streamed emb
                pl.BlockSpec((in_dim, hid), lambda i: (0, 0)),         # resident W1
                pl.BlockSpec((1, hid), lambda i: (0, 0)),              # resident b1
                pl.BlockSpec((hid, num_classes), lambda i: (0, 0)),    # resident W2
                pl.BlockSpec((1, num_classes), lambda i: (0, 0)),      # resident b2
            ],
            out_specs=pl.BlockSpec((bt, num_classes), lambda i: (i, 0)),
        ),
        compiler_params=pltpu.CompilerParams(
            dimension_semantics=("parallel",),      # shard batch tiles across TCs
            vmem_limit_bytes=vmem_limit,
        ),
        cost_estimate=cost,
    )(emb_flat, w1_c, b1_p, w2_c, b2_p)

    return out


def init_params(key, in_dim=256, hid=64, num_classes=10, dtype=jnp.float32):
    """PyTorch-style uniform(+/- 1/sqrt(fan_in)) init."""
    k1, k2, k3, k4 = jax.random.split(key, 4)
    bound1 = 1.0 / jnp.sqrt(in_dim)
    bound2 = 1.0 / jnp.sqrt(hid)
    w1 = jax.random.uniform(k1, (in_dim, hid), dtype, -bound1, bound1)
    b1 = jax.random.uniform(k2, (1, hid), dtype, -bound1, bound1)
    w2 = jax.random.uniform(k3, (hid, num_classes), dtype, -bound2, bound2)
    b2 = jax.random.uniform(k4, (1, num_classes), dtype, -bound2, bound2)
    return w1, b1, w2, b2


if __name__ == "__main__":
    key = jax.random.PRNGKey(0)
    k_emb, k_par = jax.random.split(key)

    B = 2
    NUM_CLASSES = 10
    # emb as produced by TFC: two 128-dim embeddings per sample
    emb = jax.random.normal(k_emb, (B, 2, 128), dtype=jnp.float32)
    w1, b1, w2, b2 = init_params(k_par, in_dim=2 * 128, hid=64,
                                 num_classes=NUM_CLASSES)

    pred = target_classifier_forward(emb, w1, b1, w2, b2)
    pred = jax.block_until_ready(pred)
    assert pred.shape == (B, NUM_CLASSES)

    # Reference matching the kernel's bf16-cast / f32-accumulate math.
    f32 = jnp.float32
    x_bf = emb.reshape(B, -1).astype(jnp.bfloat16).astype(f32)
    w1_bf = w1.astype(jnp.bfloat16).astype(f32)
    w2_bf = w2.astype(jnp.bfloat16).astype(f32)
    h_ref = jax.nn.sigmoid(x_bf @ w1_bf + b1.astype(f32))
    ref = h_ref.astype(jnp.bfloat16).astype(f32) @ w2_bf + b2.astype(f32)
    assert jnp.allclose(pred, ref, atol=2e-3, rtol=2e-3)

    # Sanity against the pure-f32 PyTorch-equivalent forward (loose: bf16 MXU math).
    ref_f32 = jax.nn.sigmoid(emb.reshape(B, -1) @ w1 + b1) @ w2 + b2
    assert jnp.allclose(pred, ref_f32, atol=5e-2, rtol=5e-2)

    print("KERNEL_OK")
</pallas_src>

<mosaic_0001>
module attributes {stable_mosaic.version = 11 : i64} {
  func.func @classifier_kernel(%arg0: i32, %arg1: memref<8x256xf32, #tpu.memory_space<vmem>>, %arg2: memref<256x64xbf16, #tpu.memory_space<vmem>>, %arg3: memref<1x64xf32, #tpu.memory_space<vmem>>, %arg4: memref<64x10xbf16, #tpu.memory_space<vmem>>, %arg5: memref<1x10xf32, #tpu.memory_space<vmem>>, %arg6: memref<8x10xf32, #tpu.memory_space<vmem>>) attributes {dimension_semantics = [#tpu.dimension_semantics<parallel>], iteration_bounds = array<i64: 1>, scalar_prefetch = 0 : i64, scratch_operands = 0 : i64, tpu.core_type = #tpu.core_type<tc>, window_params = [{transform_indices = @transform_0, window_bounds = array<i64: 8, 256>}, {pipeline_mode = #tpu.pipeline_mode<synchronous>, transform_indices = @transform_1, window_bounds = array<i64: 256, 64>}, {pipeline_mode = #tpu.pipeline_mode<synchronous>, transform_indices = @transform_2, window_bounds = array<i64: 1, 64>}, {pipeline_mode = #tpu.pipeline_mode<synchronous>, transform_indices = @transform_3, window_bounds = array<i64: 64, 10>}, {pipeline_mode = #tpu.pipeline_mode<synchronous>, transform_indices = @transform_4, window_bounds = array<i64: 1, 10>}, {transform_indices = @transform_5, window_bounds = array<i64: 8, 10>}]} {
    %c0 = arith.constant 0 : index
    %c0_0 = arith.constant 0 : index
    %0 = vector.load %arg1[%c0, %c0_0] : memref<8x256xf32, #tpu.memory_space<vmem>>, vector<8x256xf32>
    %1 = arith.truncf %0 : vector<8x256xf32> to vector<8x256xbf16>
    %c0_1 = arith.constant 0 : index
    %c0_2 = arith.constant 0 : index
    %2 = vector.load %arg2[%c0_1, %c0_2] : memref<256x64xbf16, #tpu.memory_space<vmem>>, vector<256x64xbf16>
    %cst = arith.constant dense<0.000000e+00> : vector<8x64xf32>
    %3 = tpu.matmul %1, %2, %cst {dimension_numbers = #tpu.dot_dimension_numbers<[1], [0], [0], [1], [0, 0, 1, 1], [], []>} : vector<8x256xbf16>, vector<256x64xbf16>, vector<8x64xf32> -> vector<8x64xf32>
    %c0_3 = arith.constant 0 : index
    %c0_4 = arith.constant 0 : index
    %4 = vector.load %arg3[%c0_3, %c0_4] : memref<1x64xf32, #tpu.memory_space<vmem>>, vector<1x64xf32>
    %5 = vector.broadcast %4 : vector<1x64xf32> to vector<8x64xf32>
    %6 = arith.addf %3, %5 : vector<8x64xf32>
    %7 = arith.negf %6 : vector<8x64xf32>
    %8 = math.exp %7 : vector<8x64xf32>
    %cst_5 = arith.constant 1.000000e+00 : f32
    %9 = vector.broadcast %cst_5 : f32 to vector<8x64xf32>
    %10 = arith.addf %9, %8 : vector<8x64xf32>
    %11 = arith.divf %9, %10 : vector<8x64xf32>
    %12 = arith.truncf %11 : vector<8x64xf32> to vector<8x64xbf16>
    %c0_6 = arith.constant 0 : index
    %c0_7 = arith.constant 0 : index
    %13 = vector.load %arg4[%c0_6, %c0_7] : memref<64x10xbf16, #tpu.memory_space<vmem>>, vector<64x10xbf16>
    %cst_8 = arith.constant dense<0.000000e+00> : vector<8x10xf32>
    %14 = tpu.matmul %12, %13, %cst_8 {dimension_numbers = #tpu.dot_dimension_numbers<[1], [0], [0], [1], [0, 0, 1, 1], [], []>} : vector<8x64xbf16>, vector<64x10xbf16>, vector<8x10xf32> -> vector<8x10xf32>
    %c0_9 = arith.constant 0 : index
    %c0_10 = arith.constant 0 : index
    %15 = vector.load %arg5[%c0_9, %c0_10] : memref<1x10xf32, #tpu.memory_space<vmem>>, vector<1x10xf32>
    %16 = vector.broadcast %15 : vector<1x10xf32> to vector<8x10xf32>
    %17 = arith.addf %14, %16 : vector<8x10xf32>
    %c0_11 = arith.constant 0 : index
    %c0_12 = arith.constant 0 : index
    %18 = vector.load %arg6[%c0_11, %c0_12] : memref<8x10xf32, #tpu.memory_space<vmem>>, vector<8x10xf32>
    tpu.vector_store %arg6[%c0_11, %c0_12], %17 {strides = array<i32>} : memref<8x10xf32, #tpu.memory_space<vmem>>, vector<8x10xf32>,
    return
  }
  func.func @transform_0(%arg0: i32) -> (i32, i32) {
    %c0_i32 = arith.constant 0 : i32
    %c0_i32_0 = arith.constant 0 : i32
    return %arg0, %c0_i32 : i32, i32
  }
  func.func @transform_1(%arg0: i32) -> (i32, i32) {
    %c0_i32 = arith.constant 0 : i32
    %c0_i32_0 = arith.constant 0 : i32
    %c0_i32_1 = arith.constant 0 : i32
    return %c0_i32, %c0_i32_0 : i32, i32
  }
  func.func @transform_2(%arg0: i32) -> (i32, i32) {
    %c0_i32 = arith.constant 0 : i32
    %c0_i32_0 = arith.constant 0 : i32
    %c0_i32_1 = arith.constant 0 : i32
    return %c0_i32, %c0_i32_0 : i32, i32
  }
  func.func @transform_3(%arg0: i32) -> (i32, i32) {
    %c0_i32 = arith.constant 0 : i32
    %c0_i32_0 = arith.constant 0 : i32
    %c0_i32_1 = arith.constant 0 : i32
    return %c0_i32, %c0_i32_0 : i32, i32
  }
  func.func @transform_4(%arg0: i32) -> (i32, i32) {
    %c0_i32 = arith.constant 0 : i32
    %c0_i32_0 = arith.constant 0 : i32
    %c0_i32_1 = arith.constant 0 : i32
    return %c0_i32, %c0_i32_0 : i32, i32
  }
  func.func @transform_5(%arg0: i32) -> (i32, i32) {
    %c0_i32 = arith.constant 0 : i32
    %c0_i32_0 = arith.constant 0 : i32
    return %arg0, %c0_i32 : i32, i32
  }
}

</mosaic_0001>

<bundles_post_ra>
// kernel: tpu_custom_call.1
= control target key start
LH: loop header
LB: loop body
LE: loop exit
PB: predicated region body
PF: predicated region fallthrough
CT: control target
= control target key end

     0   :  { %10 = vsyncpa [#allocation3], 0  ;;  %v456_v23 = vmov 0.0   ;;  %vm457_vm0 = vmmov 0   ;;  %vm273_vm1 = vcmask 523264   ;;  %vm317_vm2 = vcmask 80896   ;;  %s575_s0 = inlined_call_operand.vmem [shape: f32[2,256], index: 0, kind: input, shape index: {}]   ;;  %s576_s1 = inlined_call_operand.vmem [shape: bf16[256,64], index: 1, kind: input, shape index: {}]   ;;  %s577_s2 = inlined_call_operand.vmem [shape: f32[1,64], index: 2, kind: input, shape index: {}]   ;;  %s578_s3 = inlined_call_operand.vmem [shape: bf16[64,10], index: 3, kind: input, shape index: {}]   ;;  %s579_s4 = inlined_call_operand.vmem [shape: f32[1,10], index: 4, kind: input, shape index: {}]   ;;  %s580_s5 = inlined_call_operand.hbm [shape: f32[2,10], index: 5, kind: output, shape index: {}]  }
   0x1   :  { %v404_v0 = vld [vmem:[%s576_s1 + $0x40] sm:$0xff]   ;;  %v406_v2 = vld [vmem:[%s576_s1 + $0x48] sm:$0xff]   ;;  %v408_v4 = vld [vmem:[%s576_s1 + $0x50] sm:$0xff]   ;;  %386 = vmatprep.subr.bf16.mxu1 %v456_v23  ;;  %394 = vmatprep.mubr.msk.bf16.mxu1 %vm457_vm0, %v456_v23 }
   0x2   :  { %v405_v1 = vld [vmem:[%s576_s1] sm:$0xff]   ;;  %359 = vmatprep.subr.bf16.mxu0 %v404_v0  ;;  %v407_v3 = vld [vmem:[%s576_s1 + $0x8] sm:$0xff]   ;;  %v409_v5 = vld [vmem:[%s576_s1 + $0x10] sm:$0xff]  }
   0x3   :  { %360 = vmatpush3.bf16.msra.mxu0 %v405_v1  ;;  %v410_v6 = vld [vmem:[%s576_s1 + $0x58] sm:$0xff]   ;;  %v412_v8 = vld [vmem:[%s576_s1 + $0x60] sm:$0xff]   ;;  %v414_v10 = vld [vmem:[%s576_s1 + $0x68] sm:$0xff]  }
   0x4   :  { %361 = vmatprep.subr.bf16.mxu0 %v406_v2  ;;  %v411_v7 = vld [vmem:[%s576_s1 + $0x18] sm:$0xff]   ;;  %v413_v9 = vld [vmem:[%s576_s1 + $0x20] sm:$0xff]   ;;  %v415_v11 = vld [vmem:[%s576_s1 + $0x28] sm:$0xff]  }
   0x5   :  { %v416_v12 = vld [vmem:[%s576_s1 + $0x70] sm:$0xff]   ;;  %v430_v13 = vld.sshfl [vmem:[%s575_s0] sm:$0xff pattern:$0x76325410]  ;;  %v418_v16 = vld [vmem:[%s576_s1 + $0x78] sm:$0xff]  }
   0x6   :  { %v431_v14 = vld.sshfl [vmem:[%s575_s0 + $0x8] sm:$0xff pattern:$0x76325410]  ;;  %v417_v15 = vld [vmem:[%s576_s1 + $0x30] sm:$0xff]   ;;  %v419_v19 = vld [vmem:[%s576_s1 + $0x38] sm:$0xff]  }
   0x7   :  { %362 = vmatpush3.bf16.msra.mxu0 %v407_v3  ;;  %v47_v17 = vcombine.high %v430_v13, %v431_v14  ;;  %v46_v18 = vcombine.low %v430_v13, %v431_v14  ;;  %v422_v22 = vld [vmem:[%s578_s3] sm:$0xff]   ;;  %v423_v24 = vld [vmem:[%s578_s3 + $0x8] sm:$0xff]   ;;  %v424_v25 = vld [vmem:[%s578_s3 + $0x10] sm:$0xff]  }
   0x8   :  { %363 = vmatprep.subr.bf16.mxu0 %v408_v4  ;;  %387 = vmatpush3.bf16.msra.mxu1 %v422_v22  ;;  %v425_v26 = vld [vmem:[%s578_s3 + $0x18] sm:$0xff]   ;;  %v335_v28 = vld [vmem:[%s577_s2] ss:$0 sm:$0xff] }
   0x9   :  { %v51_v20 = vpack.c.bf16 %v47_v17, %v47_v17  ;;  %v50_v21 = vpack.c.bf16 %v46_v18, %v46_v18  ;;  %388 = vmatprep.subr.bf16.mxu1 %v456_v23  ;;  %v353_v39 = vld [vmem:[%s579_s4] ss:$0 sm:$0xff] }
   0xb   :  { %364 = vmatpush3.bf16.msra.mxu0 %v409_v5  ;;  %219 = vmatprep.mubr.bf16.mxu0 %v51_v20 }
   0xc   :  { %365 = vmatprep.subr.bf16.mxu0 %v410_v6  ;;  %389 = vmatpush3.bf16.msra.mxu1 %v423_v24 }
   0xd   :  { %390 = vmatprep.subr.bf16.mxu1 %v456_v23 }
   0xf   :  { %366 = vmatpush3.bf16.msra.mxu0 %v411_v7 }
  0x10   :  { %367 = vmatprep.subr.bf16.mxu0 %v412_v8  ;;  %391 = vmatpush3.bf16.msra.mxu1 %v424_v25 }
  0x11   :  { %392 = vmatprep.subr.bf16.mxu1 %v456_v23 }
  0x13   :  { %368 = vmatpush3.bf16.msra.mxu0 %v413_v9 }
  0x14   :  { %369 = vmatprep.subr.bf16.mxu0 %v414_v10  ;;  %393 = vmatpush3.bf16.msra.mxu1 %v425_v26 }
  0x17   :  { %370 = vmatpush3.bf16.msra.mxu0 %v415_v11 }
  0x18   :  { %371 = vmatprep.subr.bf16.mxu0 %v416_v12 }
  0x1b   :  { %372 = vmatpush3.bf16.msra.mxu0 %v417_v15 }
  0x1c   :  { %373 = vmatprep.subr.bf16.mxu0 %v418_v16 }
  0x1f   :  { %374 = vmatpush3.bf16.msra.mxu0 %v419_v19 }
  0x22   :  { %220 = vmatmul.mubr.bf16.vlgmr.msra.gmra.mrb[0].mxu0 %v50_v21 }
  0xf5   :  { %v375_v27 = vpop.f32.mrb[0].mxu0 }
  0xf6   :  { %v376_v29 = vpop.f32.mrb[1].mxu0 }
  0xf7   :  { %v377_v30 = vadd.f32 %v376_v29, %v375_v27  ;;  %v378_v31 = vpop.f32.mrb[2].mxu0 }
  0xf8   :  { %v379_v32 = vpop.f32.mrb[3].mxu0 }
  0xf9   :  { %v222_v33 = vadd.f32 %v377_v30, %v335_v28 }
  0xfb   :  { %v352_v34 = vmul.f32 -1.442695, %v222_v33 }
  0xfd   :  { %426 = vpow2.f32 %v352_v34 }
 0x107   :  { %v427_v35 = vpop.eup %426 }
 0x108   :  { %v230_v36 = vadd.f32 1.0, %v427_v35 }
 0x10a   :  { %428 = vrcp.f32 %v230_v36 }
 0x114   :  { %v429_v37 = vpop.eup %428 }
 0x115   :  { %v233_v38 = vpack.c.bf16 %v429_v37, %v429_v37 }
 0x117   :  { %395 = vmatmul.mubr.msk.bf16.vlgmr.msra.gmra.mrb[0].mxu1 %vm273_vm1, %v233_v38 }
 0x1ea   :  { %v311_v40 = vpop.f32.mrb[0].mxu1 }
 0x1eb   :  { %v312_v41 = vadd.f32 %v353_v39, %v311_v40  ;;  %v396_v42 = vpop.f32.mrb[1].mxu1 }
 0x1ec   :  { %v314_v43 = vpop.f32.mrb[2].mxu1 }
 0x1ed   :  { %318 = vst.msk [vmem:[#allocation2] sm:$0xff] %vm317_vm2, %v312_v41  ;;  %v397_v44 = vpop.f32.mrb[3].mxu1 }
 0x1ee   :  { %323 = vsyncadd [#allocation3], 96  ;;  %s458_s2 = smov [#allocation2]  }
 0x1ef   :  { %s324_s13 = sshll.u32 %s458_s2, 4  ;;  %s325_s13 = int_to_ptr.vmem [resolvable:$true] %s324_s13 }
 0x1f0   :  { %s432_s14 = scalar_lea.vmem %s325_s13, 32  ;;  %s436_s15 = scalar_lea.vmem %s325_s13, 128 }
 0x1f1   :  { %p433_p0 = scmp.ne.s32.totalorder %s325_s13, %s432_s14  ;;  %p437_p1 = scmp.lt.s32.totalorder %s325_s13, %s325_s13 }
 0x1f2   :  { %p438_p2 = scmp.lt.s32.totalorder %s436_s15, %s432_s14 }
 0x1f4   :  { %p439_p3 = por %p438_p2, %p437_p1 }
 0x1f6   :  { %p440_p4 = pnand %p439_p3, %p433_p0 }
 0x1f8   :  { %443 = shalt.err (!%p440_p4)
}
 0x1f9   :  { %s444_s17 = scalar_lea.hbm %s580_s5, 32 }
 0x1fa   :  { %p445_p5 = scmp.ne.s32.totalorder %s580_s5, %s444_s17  ;;  %p448_p6 = scmp.lt.u32.totalorder %s444_s17, %s580_s5 }
 0x1fc   :  { %p450_p7 = pnand %p448_p6, %p445_p5 }
 0x1fe   :  { %453 = shalt.err (!%p450_p7)
}
 0x1ff   :  { %s459_s22 = smov 32   ;;  %s460_s23 = smov 2  }
 0x200   :  { %330 = dma.vmem_to_hbm [thread:$0]  %s325_s13, 32, %s580_s5, [#allocation3], %s459_s22, %s459_s22, %s460_s23  }
 0x201   :  { %454 = dma.done.wait [#allocation3], 128  }
 0x202   :  { %455 = vsyncadd [#allocation3], 4294967168 }
 0x203   :  { %334 = vsyncpa [#allocation3], 1 }

</bundles_post_ra>
